<compile_context>
chip_gen: v7x
topology: tpu7x:2x2x1
jax: 0.10.0
libtpu: 0.0.40
codegen_flags: <defaults>
</compile_context>

<pallas_src>
import math

import jax
import jax.numpy as jnp
from jax.experimental import pallas as pl
from jax.experimental.pallas import tpu as pltpu


def _round_up(x, m):
    return ((x + m - 1) // m) * m


def _pick_tile(total, cap):
    """Largest multiple of 128 that divides `total` (a multiple of 128), <= cap."""
    cap = max(128, min(cap, total))
    best = 128
    d = 128
    while d <= cap:
        if total % d == 0:
            best = d
        d += 128
    return best


def _make_single_pass_kernel(scale, n_pad, exp_dtype):
    """nk == 1: whole K/V block resident in VMEM, plain (non-online) softmax."""

    def kernel(q_ref, k_ref, v_ref, o_ref):
        # q [bq, ch] time-major, k/v [ch, bk] channel-major, o [bq, ch].
        q = q_ref[...] * scale
        s = jax.lax.dot_general(                               # [bq, bk]  NN
            q, k_ref[...], (((1,), (0,)), ((), ())),
            preferred_element_type=jnp.float32)
        m = jnp.max(s, axis=-1, keepdims=True)                 # [bq, 1]
        p = jnp.exp((s - m).astype(exp_dtype))                 # [bq, bk]
        l = jnp.sum(p.astype(jnp.float32), axis=-1, keepdims=True)
        if n_pad:
            # Padded keys/values are zero -> logit 0: they add exactly
            # n_pad * exp(-m) to l and nothing to PV.  Correct l once here
            # instead of masking every logit.
            l = l - jnp.float32(n_pad) * jnp.exp(-m)
        o = jax.lax.dot_general(                               # [bq, ch]  NT
            p.astype(v_ref.dtype), v_ref[...], (((1,), (1,)), ((), ())),
            preferred_element_type=jnp.float32)
        o_ref[...] = (o * pl.reciprocal(l, approx=True)).astype(o_ref.dtype)

    return kernel


def _make_flash_kernel(scale, n_pad, exp_dtype):
    """Online softmax over multiple kv blocks (ki = innermost, 'arbitrary')."""

    def kernel(q_ref, k_ref, v_ref, o_ref, q_sc, m_sc, l_sc, acc_sc):
        ki = pl.program_id(2)

        @pl.when(ki == 0)
        def _init():
            # q block is resident across ki; scale it once per q block.
            q_sc[...] = q_ref[...] * scale
            m_sc[...] = jnp.full_like(m_sc, -jnp.inf)
            l_sc[...] = jnp.zeros_like(l_sc)
            acc_sc[...] = jnp.zeros_like(acc_sc)

        s = jax.lax.dot_general(                               # [bq, bk]  NN
            q_sc[...], k_ref[...], (((1,), (0,)), ((), ())),
            preferred_element_type=jnp.float32)

        m_prev = m_sc[...]
        m_new = jnp.maximum(m_prev, jnp.max(s, axis=-1, keepdims=True))
        alpha = jnp.exp(m_prev - m_new)                        # [bq, 1]
        p = jnp.exp((s - m_new).astype(exp_dtype))             # [bq, bk]

        l_sc[...] = alpha * l_sc[...] + jnp.sum(
            p.astype(jnp.float32), axis=-1, keepdims=True)
        acc_sc[...] = alpha * acc_sc[...] + jax.lax.dot_general(
            p.astype(v_ref.dtype), v_ref[...], (((1,), (1,)), ((), ())),
            preferred_element_type=jnp.float32)                # [bq, ch]  NT
        m_sc[...] = m_new

        @pl.when(ki == pl.num_programs(2) - 1)
        def _finalize():
            l = l_sc[...]
            if n_pad:
                l = l - jnp.float32(n_pad) * jnp.exp(-m_sc[...])
            o_ref[...] = (acc_sc[...] * pl.reciprocal(l, approx=True)
                          ).astype(o_ref.dtype)

    return kernel


def qkv_attention_legacy(qkv, n_heads, *, block_q=None, block_k=None):
    """qkv: [N, H*3*C, T] -> [N, H*C, T]  (mask=None, rel_pos=None path)."""
    bs, width, length = qkv.shape
    assert width % (3 * n_heads) == 0
    ch = width // (3 * n_heads)
    B = bs * n_heads
    dtype = qkv.dtype
    dbytes = jnp.dtype(dtype).itemsize
    # Reference scales q and k each by ch^-0.25; fold both into one q scale.
    scale = 1.0 / math.sqrt(ch)
    exp_dtype = jnp.bfloat16 if dtype == jnp.bfloat16 else jnp.float32

    # [B, 3*C, T]; per head the channel block is [q | k | v]  (free reshape).
    qkv_bh = qkv.reshape(B, 3 * ch, length)

    t128 = _round_up(length, 128)
    cap_q = block_q if block_q is not None else 1024
    cap_k = block_k if block_k is not None else 2048
    vmem_budget = 24 * 1024 * 1024

    def est_bytes(bq, bk):
        # double-buffered q/o and k/v blocks + f32 s/p temporaries + f32 acc.
        return (4 * ch * bq * dbytes + 4 * ch * bk * dbytes
                + 3 * bq * bk * 4 + 5 * bq * ch * 4)

    # --- tile / variant selection -------------------------------------------
    force_flash = block_k is not None and block_k < t128
    if length <= cap_q:
        sp_t, sp_bq = length, length          # single block: no padding at all
    else:
        sp_t, sp_bq = t128, _pick_tile(t128, cap_q)
    single = (not force_flash) and est_bytes(sp_bq, sp_t) <= vmem_budget

    if single:
        t_pad, bq, bk = sp_t, sp_bq, sp_t
    else:
        t_pad = t128
        bq = _pick_tile(t_pad, cap_q)
        bk = _pick_tile(t_pad, cap_k)
        while est_bytes(bq, bk) > vmem_budget and bk > 128:
            bk = _pick_tile(t_pad, bk - 128)
        while est_bytes(bq, bk) > vmem_budget and bq > 128:
            bq = _pick_tile(t_pad, bq - 128)
    nq = t_pad // bq
    nk = t_pad // bk
    n_pad = t_pad - length

    if n_pad:
        qkv_bh = jnp.pad(qkv_bh, ((0, 0), (0, 0), (0, n_pad)))

    # q -> time-major [B, T, C] (one small transpose) so QK^T is a plain NN
    # matmul; K and V stay channel-major (lane dim = T, no wrapper transpose).
    q_tm = jnp.swapaxes(qkv_bh[:, 0:ch, :], 1, 2)              # [B, t_pad, ch]
    if ch % 8 == 0:
        # K/V blocks are carved directly out of the packed qkv tensor.
        k_arr, v_arr = qkv_bh, qkv_bh
        k_blk, v_blk = 1, 2
    else:
        k_arr = qkv_bh[:, ch:2 * ch, :]
        v_arr = qkv_bh[:, 2 * ch:3 * ch, :]
        k_blk = v_blk = 0

    if single:
        grid = (B, nq)
        dims = ("parallel", "parallel")
        q_map = lambda b, qi: (b, qi, 0)
        o_map = lambda b, qi: (b, qi, 0)

        def kv_map(blk):
            return lambda b, qi: (b, blk, 0)   # constant in qi -> K/V resident

        kernel = _make_single_pass_kernel(scale, n_pad, exp_dtype)
        scratch = []
    else:
        grid = (B, nq, nk)
        dims = ("parallel", "parallel", "arbitrary")
        q_map = lambda b, qi, ki: (b, qi, 0)
        o_map = lambda b, qi, ki: (b, qi, 0)

        def kv_map(blk):
            return lambda b, qi, ki: (b, blk, ki)

        kernel = _make_flash_kernel(scale, n_pad, exp_dtype)
        scratch = [
            pltpu.VMEM((bq, ch), dtype),        # scaled q block (hoisted)
            pltpu.VMEM((bq, 1), jnp.float32),   # running max m
            pltpu.VMEM((bq, 1), jnp.float32),   # running sum l
            pltpu.VMEM((bq, ch), jnp.float32),  # unnormalized output acc
        ]

    vmem_limit = int(min(64 * 1024 * 1024,
                         max(32 * 1024 * 1024, int(est_bytes(bq, bk) * 1.5))))

    out = pl.pallas_call(
        kernel,
        out_shape=jax.ShapeDtypeStruct((B, t_pad, ch), dtype),
        grid_spec=pltpu.PrefetchScalarGridSpec(
            num_scalar_prefetch=0,
            grid=grid,
            in_specs=[
                pl.BlockSpec((None, bq, ch), q_map),
                pl.BlockSpec((None, ch, bk), kv_map(k_blk)),
                pl.BlockSpec((None, ch, bk), kv_map(v_blk)),
            ],
            out_specs=pl.BlockSpec((None, bq, ch), o_map),
            scratch_shapes=scratch,
        ),
        compiler_params=pltpu.CompilerParams(
            dimension_semantics=dims,
            vmem_limit_bytes=vmem_limit),
    )(q_tm, k_arr, v_arr)

    if n_pad:
        out = out[:, :length, :]
    out = jnp.swapaxes(out, 1, 2)                              # [B, ch, T]
    return out.reshape(bs, n_heads * ch, length)


def _reference(qkv, n_heads):
    """Pure-jnp reference matching the PyTorch forward (mask/rel_pos None)."""
    bs, width, length = qkv.shape
    ch = width // (3 * n_heads)
    qkv_bh = qkv.reshape(bs * n_heads, 3 * ch, length)
    q, k, v = jnp.split(qkv_bh, 3, axis=1)
    scale = 1.0 / math.sqrt(math.sqrt(ch))
    weight = jnp.einsum("bct,bcs->bts", q * scale, k * scale)
    weight = jax.nn.softmax(weight.astype(jnp.float32), axis=-1).astype(weight.dtype)
    a = jnp.einsum("bts,bcs->bct", weight, v)
    return a.reshape(bs, -1, length)


def _check(out, ref, atol, rtol):
    out32 = out.astype(jnp.float32)
    ref32 = ref.astype(jnp.float32)
    err = float(jnp.max(jnp.abs(out32 - ref32)))
    assert out.shape == ref.shape, (out.shape, ref.shape)
    assert jnp.allclose(out32, ref32, atol=atol, rtol=rtol), err


if __name__ == "__main__":
    key = jax.random.PRNGKey(0)
    k1, k2, k3, k4, k5 = jax.random.split(key, 5)

    # 1) Small shape, ch % 8 == 0: single-pass, K/V read straight out of the
    #    packed qkv tensor, no padding, no masking.
    n_heads, N, C, T = 4, 2, 8, 16
    qkv = jax.random.normal(k1, (N, n_heads * 3 * C, T), dtype=jnp.float32)
    out = jax.block_until_ready(qkv_attention_legacy(qkv, n_heads))
    _check(out, _reference(qkv, n_heads), 5e-3, 5e-3)

    # 2) Larger single-pass: whole K/V resident, several q blocks per head.
    n_heads2, N2, C2, T2 = 2, 1, 32, 640
    qkv2 = jax.random.normal(k2, (N2, n_heads2 * 3 * C2, T2), dtype=jnp.float32)
    out2 = jax.block_until_ready(qkv_attention_legacy(qkv2, n_heads2))
    _check(out2, _reference(qkv2, n_heads2), 5e-3, 5e-3)

    # 3) Force the flash (multi kv-block) path with padding: exercises the
    #    online-softmax carries and the padded-key l-correction.
    n_heads3, N3, C3, T3 = 2, 1, 32, 200
    qkv3 = jax.random.normal(k3, (N3, n_heads3 * 3 * C3, T3), dtype=jnp.float32)
    out3 = jax.block_until_ready(
        qkv_attention_legacy(qkv3, n_heads3, block_q=128, block_k=128))
    _check(out3, _reference(qkv3, n_heads3), 5e-3, 5e-3)

    # 4) ch not a multiple of 8: sliced channel-major K/V fallback path.
    n_heads4, N4, C4, T4 = 3, 2, 12, 40
    qkv4 = jax.random.normal(k4, (N4, n_heads4 * 3 * C4, T4), dtype=jnp.float32)
    out4 = jax.block_until_ready(qkv_attention_legacy(qkv4, n_heads4))
    _check(out4, _reference(qkv4, n_heads4), 5e-3, 5e-3)

    # 5) bf16 inputs: bf16 exponentials path (looser tolerance, bf16 outputs).
    n_heads5, N5, C5, T5 = 2, 1, 32, 256
    qkv5 = jax.random.normal(k5, (N5, n_heads5 * 3 * C5, T5),
                             dtype=jnp.float32).astype(jnp.bfloat16)
    out5 = jax.block_until_ready(qkv_attention_legacy(qkv5, n_heads5))
    _check(out5, _reference(qkv5, n_heads5), 5e-2, 5e-2)

    print("KERNEL_OK")
</pallas_src>

<mosaic_0001>
module attributes {stable_mosaic.version = 11 : i64} {
  func.func @kernel(%arg0: i32, %arg1: i32, %arg2: memref<1x16x8xf32, #tpu.memory_space<vmem>>, %arg3: memref<1x8x16xf32, #tpu.memory_space<vmem>>, %arg4: memref<1x8x16xf32, #tpu.memory_space<vmem>>, %arg5: memref<1x16x8xf32, #tpu.memory_space<vmem>>) attributes {dimension_semantics = [#tpu.dimension_semantics<parallel>, #tpu.dimension_semantics<parallel>], iteration_bounds = array<i64: 8, 1>, scalar_prefetch = 0 : i64, scratch_operands = 0 : i64, tpu.core_type = #tpu.core_type<tc>, window_params = [{transform_indices = @transform_0, window_bounds = array<i64: 1, 16, 8>}, {transform_indices = @transform_1, window_bounds = array<i64: 1, 8, 16>}, {transform_indices = @transform_2, window_bounds = array<i64: 1, 8, 16>}, {transform_indices = @transform_3, window_bounds = array<i64: 1, 16, 8>}]} {
    %c0 = arith.constant 0 : index
    %c0_0 = arith.constant 0 : index
    %c0_1 = arith.constant 0 : index
    %0 = vector.load %arg2[%c0, %c0_0, %c0_1] : memref<1x16x8xf32, #tpu.memory_space<vmem>>, vector<1x16x8xf32>
    %1 = vector.shape_cast %0 : vector<1x16x8xf32> to vector<16x8xf32>
    %cst = arith.constant 0.353553385 : f32
    %2 = vector.broadcast %cst : f32 to vector<16x8xf32>
    %3 = arith.mulf %1, %2 : vector<16x8xf32>
    %c0_2 = arith.constant 0 : index
    %c0_3 = arith.constant 0 : index
    %c0_4 = arith.constant 0 : index
    %4 = vector.load %arg3[%c0_2, %c0_3, %c0_4] : memref<1x8x16xf32, #tpu.memory_space<vmem>>, vector<1x8x16xf32>
    %5 = vector.shape_cast %4 : vector<1x8x16xf32> to vector<8x16xf32>
    %cst_5 = arith.constant dense<0.000000e+00> : vector<16x16xf32>
    %6 = tpu.matmul %3, %5, %cst_5 {dimension_numbers = #tpu.dot_dimension_numbers<[1], [0], [0], [1], [0, 0, 1, 1], [], []>} : vector<16x8xf32>, vector<8x16xf32>, vector<16x16xf32> -> vector<16x16xf32>
    %cst_6 = arith.constant dense<0xFF800000> : vector<16xf32>
    %7 = vector.multi_reduction <maximumf>, %6, %cst_6 [1] : vector<16x16xf32> to vector<16xf32>
    %8 = vector.shape_cast %7 : vector<16xf32> to vector<16x1xf32>
    %9 = vector.broadcast %8 : vector<16x1xf32> to vector<16x16xf32>
    %10 = arith.subf %6, %9 : vector<16x16xf32>
    %11 = math.exp %10 : vector<16x16xf32>
    %cst_7 = arith.constant dense<0.000000e+00> : vector<16xf32>
    %12 = vector.multi_reduction <add>, %11, %cst_7 [1] : vector<16x16xf32> to vector<16xf32>
    %13 = vector.shape_cast %12 : vector<16xf32> to vector<16x1xf32>
    %c0_8 = arith.constant 0 : index
    %c0_9 = arith.constant 0 : index
    %c0_10 = arith.constant 0 : index
    %14 = vector.load %arg4[%c0_8, %c0_9, %c0_10] : memref<1x8x16xf32, #tpu.memory_space<vmem>>, vector<1x8x16xf32>
    %15 = vector.shape_cast %14 : vector<1x8x16xf32> to vector<8x16xf32>
    %cst_11 = arith.constant dense<0.000000e+00> : vector<16x8xf32>
    %16 = tpu.matmul %11, %15, %cst_11 {dimension_numbers = #tpu.dot_dimension_numbers<[1], [1], [0], [0], [0, 0, 1, 0], [], []>} : vector<16x16xf32>, vector<8x16xf32>, vector<16x8xf32> -> vector<16x8xf32>
    %17 = tpu.reciprocal %13 {approx = true} : vector<16x1xf32> -> vector<16x1xf32>
    %18 = vector.broadcast %17 : vector<16x1xf32> to vector<16x8xf32>
    %19 = arith.mulf %16, %18 : vector<16x8xf32>
    %c0_12 = arith.constant 0 : index
    %c0_13 = arith.constant 0 : index
    %c0_14 = arith.constant 0 : index
    %20 = vector.load %arg5[%c0_12, %c0_13, %c0_14] : memref<1x16x8xf32, #tpu.memory_space<vmem>>, vector<1x16x8xf32>
    %21 = vector.shape_cast %20 : vector<1x16x8xf32> to vector<16x8xf32>
    %22 = vector.shape_cast %19 : vector<16x8xf32> to vector<1x16x8xf32>
    tpu.vector_store %arg5[%c0_12, %c0_13, %c0_14], %22 {strides = array<i32>} : memref<1x16x8xf32, #tpu.memory_space<vmem>>, vector<1x16x8xf32>,
    return
  }
  func.func @transform_0(%arg0: i32, %arg1: i32) -> (i32, i32, i32) {
    %c0_i32 = arith.constant 0 : i32
    %c0_i32_0 = arith.constant 0 : i32
    return %arg0, %arg1, %c0_i32 : i32, i32, i32
  }
  func.func @transform_1(%arg0: i32, %arg1: i32) -> (i32, i32, i32) {
    %c1_i32 = arith.constant 1 : i32
    %c0_i32 = arith.constant 0 : i32
    %c0_i32_0 = arith.constant 0 : i32
    return %arg0, %c1_i32, %c0_i32 : i32, i32, i32
  }
  func.func @transform_2(%arg0: i32, %arg1: i32) -> (i32, i32, i32) {
    %c2_i32 = arith.constant 2 : i32
    %c0_i32 = arith.constant 0 : i32
    %c0_i32_0 = arith.constant 0 : i32
    return %arg0, %c2_i32, %c0_i32 : i32, i32, i32
  }
  func.func @transform_3(%arg0: i32, %arg1: i32) -> (i32, i32, i32) {
    %c0_i32 = arith.constant 0 : i32
    %c0_i32_0 = arith.constant 0 : i32
    return %arg0, %arg1, %c0_i32 : i32, i32, i32
  }
}

</mosaic_0001>

<bundles_post_ra>
// kernel: tpu_custom_call.1
= control target key start
LH: loop header
LB: loop body
LE: loop exit
PB: predicated region body
PF: predicated region fallthrough
CT: control target
= control target key end

     0   :  { %s690_s12 = smov 0   ;;  %s692_s13 = smov 0   ;;  %s749_s0 = inlined_call_operand.vmem [shape: f32[8,16,8], index: 0, kind: input, shape index: {}]   ;;  %s750_s1 = inlined_call_operand.vmem [shape: f32[8,24,16], index: 1, kind: input, shape index: {}]   ;;  %s751_s2 = inlined_call_operand.vmem [shape: f32[8,24,16], index: 2, kind: input, shape index: {}]   ;;  %s752_s3 = inlined_call_operand.vmem [shape: f32[8,16,8], index: 3, kind: output, shape index: {}]  }
   0x1   :  { %s694_s14 = smov 0  }
   0x2 LB: > { %s25_s15 = sadd.s32 1, %s664_s13  ;;  %p580_p0 = scmp.ge.s32.totalorder %s668_s14, 1  ;;  %s668_s14 = sphi %s694_s14, %s13_s14   ;;  %s664_s13 = sphi %s692_s13, %s754_s13   ;;  %s660_s12 = sphi %s690_s12, %s753_s12  }
   0x3   : > { %p27_p1 = scmp.ge.s32.totalorder %s25_s15, 8  ;;  %p180_p2 = scmp.lt.s32.totalorder %s668_s14, 9 }
   0x5   : > { %s756_s15 = smov (%p27_p1, %s25_s15), 0  ;;  %p181_p3 = pnand %p580_p0, %p180_p2 }
   0x6   : > { %p225_p4 = scmp.lt.s32.totalorder (!%p181_p3), %s660_s12, 7  ;;  %vm261_vm0 = vcmask (!%p181_p3), 64512   ;;  %vm343_vm1 = vcmask (!%p181_p3), 130048  }
   0x7   : > { %184 = sbr.rel (%p181_p3) target bundleno = 612 (0x264), region = 32 }
   0xe   : > { %s758_s12 = smov (!%p225_p4, %s660_s12), 7 }
   0xf   : > { %s583_s16 = smul.u32 24, %s758_s12  ;;  %s596_s17 = sshll.u32 %s758_s12, 4 }
  0x10   : > { %s232_s20 = scalar_lea.vmem %s749_s0, %s596_s17  ;;  %s254_s29 = scalar_lea.vmem %s752_s3, %s596_s17 }
  0x11   : > { %s517_s23 = scalar_lea.vmem %s750_s1, %s583_s16  ;;  %v256_v0 = vld [vmem:[%s232_s20] sm:$0xff]  ;;  %v257_v1 = vld [vmem:[%s232_s20 + $0x8] sm:$0xff]  ;;  %s521_s26 = scalar_lea.vmem %s751_s2, %s583_s16 }
  0x12   : > { %v587_v2 = vld [vmem:[%s517_s23 + $0x8] sm:$0xff]  ;;  %v258_v3 = vmul.f32 0.35355338, %v256_v0  ;;  %v259_v4 = vmul.f32 0.35355338, %v257_v1  ;;  %v590_v9 = vld [vmem:[%s521_s26 + $0x10] sm:$0xff] }
  0x13   : > { %604 = vmatprep.subr.mxu0 %v587_v2  ;;  %609 = vmatprep.subr.msk.mxu1 %vm343_vm1, %v590_v9 }
  0x14   : > { %605 = vmatpush3.msra.mxu0 %v587_v2  ;;  %606 = vmatprep.mubr.msk.f32.mxu0 %vm261_vm0, %v258_v3 }
  0x15   : > { %607 = vmatmul.mubr.msk.f32.vlgmr.msra.gmra.mrb[0].mxu0 %vm261_vm0, %v259_v4  ;;  %610 = vmatpush3.xpose.msk.msra.mxu1 %vm343_vm1, %v590_v9 }
  0xe8   : > { %v608_v5 = vpop.f32.mrb[0].mxu0 }
  0xe9   : > { %v334_v6 = vpop.f32.mrb[1].mxu0  ;;  %v347_v8 = vsel %vm343_vm1, %v608_v5, -inf }
  0xea   : > { %v344_v7 = vsel %vm343_vm1, %v334_v6, -inf }
  0xeb   : > { %345 = vmax.xlane.f32.xlu0 %v344_v7 }
  0xef   : > { %348 = vmax.xlane.f32.xlu0 %v347_v8 }
 0x178   : > { %v346_v10 = vpop.xlane.xlu0 %345 }
 0x179   : > { %v350_v11 = vsub.f32 %v334_v6, %v346_v10 }
 0x17b   : > { %v352_v12 = vmul.f32 1.442695, %v350_v11 }
 0x17c   : > { %v349_v13 = vpop.xlane.xlu0 %348 }
 0x17d   : > { %638 = vpow2.f32 %v352_v12  ;;  %v351_v14 = vsub.f32 %v608_v5, %v349_v13 }
 0x17f   : > { %v354_v15 = vmul.f32 1.442695, %v351_v14 }
 0x181   : > { %640 = vpow2.f32 %v354_v15 }
 0x187   : > { %v639_v16 = vpop.eup %638 }
 0x188   : > { %611 = vmatprep.mubr.msk.f32.mxu1 %vm343_vm1, %v639_v16  ;;  %v356_v17 = vsel %vm343_vm1, %v639_v16, 0.0 }
 0x189   : > { %357 = vadd.xlane.f32.xlu1 %v356_v17 }
 0x18b   : > { %v641_v18 = vpop.eup %640 }
 0x18c   : > { %612 = vmatmul.mubr.msk.f32.vlgmr.msra.gmra.mrb[0].mxu1 %vm343_vm1, %v641_v18  ;;  %v359_v19 = vsel %vm343_vm1, %v641_v18, 0.0 }
 0x18d   : > { %360 = vadd.xlane.f32.xlu1 %v359_v19 }
 0x216   : > { %v358_v20 = vpop.xlane.xlu1 %357 }
 0x21a   : > { %v361_v21 = vpop.xlane.xlu1 %360 }
 0x21b   : > { %642 = vrcp.f32 %v361_v21 }
 0x21c   : > { %644 = vrcp.f32 %v358_v20 }
 0x225   : > { %v643_v22 = vpop.eup %642 }
 0x226   : > { %v645_v24 = vpop.eup %644 }
 0x25f   : > { %v613_v23 = vpop.f32.mrb[0].mxu1 }
 0x260   : > { %v450_v25 = vmul.f32 %v643_v22, %v613_v23  ;;  %v438_v26 = vpop.f32.mrb[1].mxu1 }
 0x261   : > { %v449_v27 = vmul.f32 %v645_v24, %v438_v26 }
 0x262   : > { %452 = vst.msk [vmem:[%s254_s29 + $0x8] sm:$0xff] %vm261_vm0, %v450_v25 }
 0x263   : > { %451 = vst.msk [vmem:[%s254_s29] sm:$0xff] %vm261_vm0, %v449_v27 }
 0x264 PF: > { %s13_s14 = sadd.s32 1, %s668_s14   ;;  %s753_s12 = smov %s664_s13 }
 0x265   : > { %p10_p5 = scmp.ge.s32.totalorder %s13_s14, 10   ;;  %s754_s13 = smov %s756_s15 }
 0x267   :  { %12 = sbr.rel (!%p10_p5) target bundleno = 2 (0x2), region = 68 }

</bundles_post_ra>
